<compile_context>
chip_gen: v7x
topology: tpu7x:2x2x1
jax: 0.10.0
libtpu: 0.0.40
codegen_flags: <defaults>
</compile_context>

<pallas_src>
import jax
import jax.numpy as jnp
from jax.experimental import pallas as pl
from jax.experimental.pallas import tpu as pltpu

OBS_DIM = 96       # cent_obs_shape = (96,)
HIDDEN = 64        # args.hidden_size
BATCH = 8
LN_EPS = 1e-5      # torch.nn.LayerNorm default eps

OUT_LANES = 128    # lane width of the packed output slab

# ---- single parameter slab layout (f32, SLAB_ROWS x SLAB_LANES) ----
SLAB_LANES = 512

# vector rows (each a 1 x <=128 row at lane 0)
_R_FN_G, _R_FN_B = 0, 1
_R_B1, _R_G1, _R_BE1 = 2, 3, 4
_R_B2, _R_G2, _R_BE2 = 5, 6, 7
_R_BR, _R_BZ, _R_BIN, _R_BHN = 8, 9, 10, 11
_R_WV = 12                      # wv_eff = gg*wv in lanes 0..63, bv_eff scalar at lane 64
ROW_W1 = 16                     # w1 (96, 64) at rows 16..111, lanes   0.. 63
ROW_W2 = 16                     # w2 (64, 64) at rows 16.. 79, lanes 128..191
ROW_GRU = 112                   # W' (128, 512) at rows 112..239 (gates lane-aligned)
SLAB_ROWS = ROW_GRU + 2 * HIDDEN  # 240


def _layernorm(x, g, b):
    mu = jnp.mean(x, axis=-1, keepdims=True)
    var = jnp.mean(jnp.square(x - mu), axis=-1, keepdims=True)
    return (x - mu) * jax.lax.rsqrt(var + LN_EPS) * g + b


def r_critic_kernel(obs_ref, h_ref, mask_ref, p_ref, out_ref):
    f32 = jnp.float32
    H, D = HIDDEN, OBS_DIM

    # ---- unpack the single parameter slab (static slices of a VMEM-resident ref) ----
    fn_g = p_ref[_R_FN_G:_R_FN_G + 1, :D]
    fn_b = p_ref[_R_FN_B:_R_FN_B + 1, :D]
    b1 = p_ref[_R_B1:_R_B1 + 1, :H]
    g1 = p_ref[_R_G1:_R_G1 + 1, :H]
    be1 = p_ref[_R_BE1:_R_BE1 + 1, :H]
    b2 = p_ref[_R_B2:_R_B2 + 1, :H]
    g2 = p_ref[_R_G2:_R_G2 + 1, :H]
    be2 = p_ref[_R_BE2:_R_BE2 + 1, :H]
    b_r = p_ref[_R_BR:_R_BR + 1, :H]          # bir + bhr (folded, exact)
    b_z = p_ref[_R_BZ:_R_BZ + 1, :H]          # biz + bhz (folded, exact)
    b_in = p_ref[_R_BIN:_R_BIN + 1, :H]       # input bias of n gate
    b_hn = p_ref[_R_BHN:_R_BHN + 1, :H]       # hidden bias of n gate (scaled by r)
    wv_eff = p_ref[_R_WV:_R_WV + 1, :H]       # gg * wv  (output-LN gamma folded in)
    bv_eff = p_ref[_R_WV:_R_WV + 1, H:H + 1]  # sum(gb*wv) + bv (scalar)

    w1 = p_ref[ROW_W1:ROW_W1 + D, 0:H]            # (96, 64)
    w2 = p_ref[ROW_W2:ROW_W2 + H, 128:128 + H]    # (64, 64)  (lane-128 aligned)
    w_gru = p_ref[ROW_GRU:ROW_GRU + 2 * H, :]     # (128, 512) block weight W'

    # ---- MLPBase: feature LayerNorm -> fc1 -> ReLU -> LN -> fc_h -> ReLU -> LN ----
    x = obs_ref[...]
    x = _layernorm(x, fn_g, fn_b)
    x = jnp.maximum(jnp.dot(x, w1, preferred_element_type=f32) + b1, 0.0)
    x = _layernorm(x, g1, be1)
    x = jnp.maximum(jnp.dot(x, w2, preferred_element_type=f32) + b2, 0.0)
    x = _layernorm(x, g2, be2)

    # ---- RNNLayer: single-step GRU with mask reset, all gates in ONE MXU push ----
    h = h_ref[...] * mask_ref[...]                       # (B, H) * (B, 1)
    xh = jnp.concatenate([x, h], axis=1)                 # (B, 2H) = (B, 128)
    g = jnp.dot(xh, w_gru, preferred_element_type=f32)   # (B, 512)
    # lane-aligned gate blocks: [r_sum | z_sum | gx_n | gh_n] at 0 / 128 / 256 / 384
    r = jax.nn.sigmoid(g[:, 0:H] + b_r)
    z = jax.nn.sigmoid(g[:, 128:128 + H] + b_z)
    n = jnp.tanh(g[:, 256:256 + H] + b_in + r * (g[:, 384:384 + H] + b_hn))
    h_new = (1.0 - z) * n + z * h

    # ---- v_out with the RNNLayer output LayerNorm folded into the weight ----
    mu = jnp.mean(h_new, axis=-1, keepdims=True)
    var = jnp.mean(jnp.square(h_new - mu), axis=-1, keepdims=True)
    norm = (h_new - mu) * jax.lax.rsqrt(var + LN_EPS)
    val = jnp.sum(norm * wv_eff, axis=-1, keepdims=True) + bv_eff   # (B, 1)

    # ---- single lane-dense (B, 128) store: [h_new | value | zero pad] ----
    pad = jnp.zeros((h_new.shape[0], OUT_LANES - H - 1), f32)
    out_ref[...] = jnp.concatenate([h_new, val, pad], axis=1)


def pack_params(p):
    """Build the single (SLAB_ROWS, SLAB_LANES) parameter slab.  Called ONCE at init
    (outside the per-step / jitted path), so the concat/pad cost is paid exactly once."""
    H, D = HIDDEN, OBS_DIM
    f32 = jnp.float32
    slab = jnp.zeros((SLAB_ROWS, SLAB_LANES), f32)

    def row(r, v):
        v = jnp.asarray(v, f32).reshape(1, -1)
        return slab.at[r:r + 1, :v.shape[1]].set(v)

    slab = row(_R_FN_G, p["fn_g"]);      slab = row(_R_FN_B, p["fn_b"])
    slab = row(_R_B1, p["b1"]);          slab = row(_R_G1, p["g1"]);   slab = row(_R_BE1, p["be1"])
    slab = row(_R_B2, p["b2"]);          slab = row(_R_G2, p["g2"]);   slab = row(_R_BE2, p["be2"])
    slab = row(_R_BR, p["bir"] + p["bhr"])        # exact fold
    slab = row(_R_BZ, p["biz"] + p["bhz"])        # exact fold
    slab = row(_R_BIN, p["b_in"]);       slab = row(_R_BHN, p["bhn"])  # n-gate biases stay separate

    wv = jnp.asarray(p["wv"], f32).reshape(1, H)
    wv_eff = p["gg"].reshape(1, H) * wv                                # fold output-LN gamma
    bv_eff = jnp.sum(p["gb"].reshape(1, H) * wv) + p["bv"].reshape(())  # fold output-LN beta + bias
    slab = slab.at[_R_WV:_R_WV + 1, :H].set(wv_eff)
    slab = slab.at[_R_WV, H].set(bv_eff)

    slab = slab.at[ROW_W1:ROW_W1 + D, 0:H].set(jnp.asarray(p["w1"], f32))
    slab = slab.at[ROW_W2:ROW_W2 + H, 128:128 + H].set(jnp.asarray(p["w2"], f32))

    # fused GRU block weight W' (2H, 512): xh @ W' -> [r_sum | z_sum | gx_n | gh_n],
    # each gate block starting at a 128-lane vreg boundary; zero blocks precomputed.
    r0 = ROW_GRU
    slab = slab.at[r0:r0 + H, 0:H].set(p["wir"])
    slab = slab.at[r0 + H:r0 + 2 * H, 0:H].set(p["whr"])
    slab = slab.at[r0:r0 + H, 128:128 + H].set(p["wiz"])
    slab = slab.at[r0 + H:r0 + 2 * H, 128:128 + H].set(p["whz"])
    slab = slab.at[r0:r0 + H, 256:256 + H].set(p["win"])
    slab = slab.at[r0 + H:r0 + 2 * H, 384:384 + H].set(p["whn"])
    return slab


def r_critic_forward(cent_obs, rnn_states, masks, param_slab):
    """cent_obs (B, OBS_DIM), rnn_states (B, 1, HIDDEN), masks (B, 1), param_slab (240, 512)
       -> (values (B, 1), rnn_states (B, 1, HIDDEN))."""
    b = cent_obs.shape[0]
    h0 = rnn_states[:, 0, :]                          # recurrent_N = 1

    vmem = pl.BlockSpec(memory_space=pltpu.MemorySpace.VMEM)
    out = pl.pallas_call(
        r_critic_kernel,
        out_shape=jax.ShapeDtypeStruct((b, OUT_LANES), jnp.float32),
        in_specs=[vmem] * 4,      # grid-less: whole arrays resident in VMEM, no pipelining
        out_specs=vmem,
    )(cent_obs, h0, masks, param_slab)

    values = out[:, HIDDEN:HIDDEN + 1]
    new_states = out[:, :HIDDEN][:, None, :]
    return values, new_states


def init_params(key):
    """Deterministic synthetic parameters matching the module's shapes (not a checkpoint load)."""
    ks = jax.random.split(key, 15)
    f32 = jnp.float32

    def w(k, shape, scale=0.1):
        return (scale * jax.random.normal(k, shape)).astype(f32)

    H, D = HIDDEN, OBS_DIM
    return dict(
        # MLPBase feature_norm
        fn_g=jnp.ones((1, D), f32), fn_b=jnp.zeros((1, D), f32),
        # fc1: Linear(D, H) + LayerNorm
        w1=w(ks[0], (D, H)), b1=jnp.zeros((1, H), f32),
        g1=jnp.ones((1, H), f32), be1=jnp.zeros((1, H), f32),
        # fc_h (layer_N = 1): Linear(H, H) + LayerNorm
        w2=w(ks[1], (H, H)), b2=jnp.zeros((1, H), f32),
        g2=jnp.ones((1, H), f32), be2=jnp.zeros((1, H), f32),
        # GRU gate weights, per-gate (in, H); PyTorch stores (3H, in) in [r, z, n] order
        wir=w(ks[2], (H, H)), wiz=w(ks[3], (H, H)), win=w(ks[4], (H, H)),
        whr=w(ks[5], (H, H)), whz=w(ks[6], (H, H)), whn=w(ks[7], (H, H)),
        bir=w(ks[8], (1, H), 0.01), biz=w(ks[9], (1, H), 0.01), b_in=w(ks[10], (1, H), 0.01),
        bhr=w(ks[11], (1, H), 0.01), bhz=w(ks[12], (1, H), 0.01), bhn=w(ks[13], (1, H), 0.01),
        # RNNLayer output LayerNorm
        gg=jnp.ones((1, H), f32), gb=jnp.zeros((1, H), f32),
        # v_out: Linear(H, 1)
        wv=w(ks[14], (H, 1)), bv=jnp.zeros((1, 1), f32),
    )


def r_critic_reference(cent_obs, rnn_states, masks, p):
    """Pure-JAX reference of the same forward pass (unfused, for correctness check)."""
    x = _layernorm(cent_obs, p["fn_g"], p["fn_b"])
    x = _layernorm(jnp.maximum(x @ p["w1"] + p["b1"], 0.0), p["g1"], p["be1"])
    x = _layernorm(jnp.maximum(x @ p["w2"] + p["b2"], 0.0), p["g2"], p["be2"])
    h = rnn_states[:, 0, :] * masks
    r = jax.nn.sigmoid(x @ p["wir"] + p["bir"] + h @ p["whr"] + p["bhr"])
    z = jax.nn.sigmoid(x @ p["wiz"] + p["biz"] + h @ p["whz"] + p["bhz"])
    n = jnp.tanh(x @ p["win"] + p["b_in"] + r * (h @ p["whn"] + p["bhn"]))
    h_new = (1.0 - z) * n + z * h
    feat = _layernorm(h_new, p["gg"], p["gb"])
    values = feat @ p["wv"] + p["bv"]
    return values, h_new[:, None, :]


if __name__ == "__main__":
    key = jax.random.PRNGKey(0)
    k_obs, k_h, k_p = jax.random.split(key, 3)

    cent_obs = jax.random.normal(k_obs, (BATCH, OBS_DIM), jnp.float32)
    rnn_states = jax.random.normal(k_h, (BATCH, 1, HIDDEN), jnp.float32)  # (B, recurrent_N=1, H)
    masks = jnp.ones((BATCH, 1), jnp.float32).at[0, 0].set(0.0)           # reset first env's hidden state

    params = init_params(k_p)

    # pack ONCE at init; the jitted per-step forward only consumes the ready-made slab
    param_slab = jax.block_until_ready(pack_params(params))

    forward = jax.jit(r_critic_forward)
    values, new_states = forward(cent_obs, rnn_states, masks, param_slab)
    jax.block_until_ready((values, new_states))

    # correctness check against pure-JAX (unfused) reference
    v_ref, s_ref = r_critic_reference(cent_obs, rnn_states, masks, params)
    assert values.shape == (BATCH, 1) and new_states.shape == (BATCH, 1, HIDDEN)
    assert jnp.allclose(values, v_ref, atol=1e-5, rtol=1e-4), float(jnp.max(jnp.abs(values - v_ref)))
    assert jnp.allclose(new_states, s_ref, atol=1e-5, rtol=1e-4), float(jnp.max(jnp.abs(new_states - s_ref)))

    print("KERNEL_OK")
</pallas_src>

<mosaic_0001>
module attributes {stable_mosaic.version = 11 : i64} {
  func.func @r_critic_kernel(%arg0: memref<8x96xf32, #tpu.memory_space<vmem>>, %arg1: memref<8x64xf32, #tpu.memory_space<vmem>>, %arg2: memref<8x1xf32, #tpu.memory_space<vmem>>, %arg3: memref<240x512xf32, #tpu.memory_space<vmem>>, %arg4: memref<8x128xf32, #tpu.memory_space<vmem>>) attributes {dimension_semantics = [], scalar_prefetch = 0 : i64, scratch_operands = 0 : i64, tpu.core_type = #tpu.core_type<tc>} {
    %c0 = arith.constant 0 : index
    %c0_0 = arith.constant 0 : index
    %0 = vector.load %arg3[%c0, %c0_0] : memref<240x512xf32, #tpu.memory_space<vmem>>, vector<1x96xf32>
    %c1 = arith.constant 1 : index
    %c0_1 = arith.constant 0 : index
    %1 = vector.load %arg3[%c1, %c0_1] : memref<240x512xf32, #tpu.memory_space<vmem>>, vector<1x96xf32>
    %c2 = arith.constant 2 : index
    %c0_2 = arith.constant 0 : index
    %2 = vector.load %arg3[%c2, %c0_2] : memref<240x512xf32, #tpu.memory_space<vmem>>, vector<1x64xf32>
    %c3 = arith.constant 3 : index
    %c0_3 = arith.constant 0 : index
    %3 = vector.load %arg3[%c3, %c0_3] : memref<240x512xf32, #tpu.memory_space<vmem>>, vector<1x64xf32>
    %c4 = arith.constant 4 : index
    %c0_4 = arith.constant 0 : index
    %4 = vector.load %arg3[%c4, %c0_4] : memref<240x512xf32, #tpu.memory_space<vmem>>, vector<1x64xf32>
    %c5 = arith.constant 5 : index
    %c0_5 = arith.constant 0 : index
    %5 = vector.load %arg3[%c5, %c0_5] : memref<240x512xf32, #tpu.memory_space<vmem>>, vector<1x64xf32>
    %c6 = arith.constant 6 : index
    %c0_6 = arith.constant 0 : index
    %6 = vector.load %arg3[%c6, %c0_6] : memref<240x512xf32, #tpu.memory_space<vmem>>, vector<1x64xf32>
    %c7 = arith.constant 7 : index
    %c0_7 = arith.constant 0 : index
    %7 = vector.load %arg3[%c7, %c0_7] : memref<240x512xf32, #tpu.memory_space<vmem>>, vector<1x64xf32>
    %c8 = arith.constant 8 : index
    %c0_8 = arith.constant 0 : index
    %8 = vector.load %arg3[%c8, %c0_8] : memref<240x512xf32, #tpu.memory_space<vmem>>, vector<1x64xf32>
    %c9 = arith.constant 9 : index
    %c0_9 = arith.constant 0 : index
    %9 = vector.load %arg3[%c9, %c0_9] : memref<240x512xf32, #tpu.memory_space<vmem>>, vector<1x64xf32>
    %c10 = arith.constant 10 : index
    %c0_10 = arith.constant 0 : index
    %10 = vector.load %arg3[%c10, %c0_10] : memref<240x512xf32, #tpu.memory_space<vmem>>, vector<1x64xf32>
    %c11 = arith.constant 11 : index
    %c0_11 = arith.constant 0 : index
    %11 = vector.load %arg3[%c11, %c0_11] : memref<240x512xf32, #tpu.memory_space<vmem>>, vector<1x64xf32>
    %c12 = arith.constant 12 : index
    %c0_12 = arith.constant 0 : index
    %12 = vector.load %arg3[%c12, %c0_12] : memref<240x512xf32, #tpu.memory_space<vmem>>, vector<1x64xf32>
    %c12_13 = arith.constant 12 : index
    %c64 = arith.constant 64 : index
    %13 = vector.load %arg3[%c12_13, %c64] : memref<240x512xf32, #tpu.memory_space<vmem>>, vector<1x1xf32>
    %c16 = arith.constant 16 : index
    %c0_14 = arith.constant 0 : index
    %14 = vector.load %arg3[%c16, %c0_14] : memref<240x512xf32, #tpu.memory_space<vmem>>, vector<96x64xf32>
    %c16_15 = arith.constant 16 : index
    %c128 = arith.constant 128 : index
    %15 = vector.load %arg3[%c16_15, %c128] : memref<240x512xf32, #tpu.memory_space<vmem>>, vector<64x64xf32>
    %c112 = arith.constant 112 : index
    %c0_16 = arith.constant 0 : index
    %16 = vector.load %arg3[%c112, %c0_16] : memref<240x512xf32, #tpu.memory_space<vmem>>, vector<128x512xf32>
    %c0_17 = arith.constant 0 : index
    %c0_18 = arith.constant 0 : index
    %17 = vector.load %arg0[%c0_17, %c0_18] : memref<8x96xf32, #tpu.memory_space<vmem>>, vector<8x96xf32>
    %cst = arith.constant dense<0.000000e+00> : vector<8xf32>
    %18 = vector.multi_reduction <add>, %17, %cst [1] : vector<8x96xf32> to vector<8xf32>
    %19 = vector.shape_cast %18 : vector<8xf32> to vector<8x1xf32>
    %cst_19 = arith.constant 9.600000e+01 : f32
    %20 = vector.broadcast %cst_19 : f32 to vector<8x1xf32>
    %21 = arith.divf %19, %20 : vector<8x1xf32>
    %22 = vector.broadcast %21 : vector<8x1xf32> to vector<8x96xf32>
    %23 = arith.subf %17, %22 : vector<8x96xf32>
    %24 = arith.mulf %23, %23 : vector<8x96xf32>
    %cst_20 = arith.constant dense<0.000000e+00> : vector<8xf32>
    %25 = vector.multi_reduction <add>, %24, %cst_20 [1] : vector<8x96xf32> to vector<8xf32>
    %26 = vector.shape_cast %25 : vector<8xf32> to vector<8x1xf32>
    %cst_21 = arith.constant 9.600000e+01 : f32
    %27 = vector.broadcast %cst_21 : f32 to vector<8x1xf32>
    %28 = arith.divf %26, %27 : vector<8x1xf32>
    %29 = vector.broadcast %21 : vector<8x1xf32> to vector<8x96xf32>
    %30 = arith.subf %17, %29 : vector<8x96xf32>
    %cst_22 = arith.constant 9.99999974E-6 : f32
    %31 = vector.broadcast %cst_22 : f32 to vector<8x1xf32>
    %32 = arith.addf %28, %31 : vector<8x1xf32>
    %33 = math.rsqrt %32 : vector<8x1xf32>
    %34 = vector.broadcast %33 : vector<8x1xf32> to vector<8x96xf32>
    %35 = arith.mulf %30, %34 : vector<8x96xf32>
    %36 = vector.broadcast %0 : vector<1x96xf32> to vector<8x96xf32>
    %37 = arith.mulf %35, %36 : vector<8x96xf32>
    %38 = vector.broadcast %1 : vector<1x96xf32> to vector<8x96xf32>
    %39 = arith.addf %37, %38 : vector<8x96xf32>
    %cst_23 = arith.constant dense<0.000000e+00> : vector<8x64xf32>
    %40 = tpu.matmul %39, %14, %cst_23 {dimension_numbers = #tpu.dot_dimension_numbers<[1], [0], [0], [1], [0, 0, 1, 1], [], []>} : vector<8x96xf32>, vector<96x64xf32>, vector<8x64xf32> -> vector<8x64xf32>
    %41 = vector.broadcast %2 : vector<1x64xf32> to vector<8x64xf32>
    %42 = arith.addf %40, %41 : vector<8x64xf32>
    %cst_24 = arith.constant 0.000000e+00 : f32
    %43 = vector.broadcast %cst_24 : f32 to vector<8x64xf32>
    %44 = arith.maximumf %42, %43 : vector<8x64xf32>
    %cst_25 = arith.constant dense<0.000000e+00> : vector<8xf32>
    %45 = vector.multi_reduction <add>, %44, %cst_25 [1] : vector<8x64xf32> to vector<8xf32>
    %46 = vector.shape_cast %45 : vector<8xf32> to vector<8x1xf32>
    %cst_26 = arith.constant 6.400000e+01 : f32
    %47 = vector.broadcast %cst_26 : f32 to vector<8x1xf32>
    %48 = arith.divf %46, %47 : vector<8x1xf32>
    %49 = vector.broadcast %48 : vector<8x1xf32> to vector<8x64xf32>
    %50 = arith.subf %44, %49 : vector<8x64xf32>
    %51 = arith.mulf %50, %50 : vector<8x64xf32>
    %cst_27 = arith.constant dense<0.000000e+00> : vector<8xf32>
    %52 = vector.multi_reduction <add>, %51, %cst_27 [1] : vector<8x64xf32> to vector<8xf32>
    %53 = vector.shape_cast %52 : vector<8xf32> to vector<8x1xf32>
    %cst_28 = arith.constant 6.400000e+01 : f32
    %54 = vector.broadcast %cst_28 : f32 to vector<8x1xf32>
    %55 = arith.divf %53, %54 : vector<8x1xf32>
    %56 = vector.broadcast %48 : vector<8x1xf32> to vector<8x64xf32>
    %57 = arith.subf %44, %56 : vector<8x64xf32>
    %cst_29 = arith.constant 9.99999974E-6 : f32
    %58 = vector.broadcast %cst_29 : f32 to vector<8x1xf32>
    %59 = arith.addf %55, %58 : vector<8x1xf32>
    %60 = math.rsqrt %59 : vector<8x1xf32>
    %61 = vector.broadcast %60 : vector<8x1xf32> to vector<8x64xf32>
    %62 = arith.mulf %57, %61 : vector<8x64xf32>
    %63 = vector.broadcast %3 : vector<1x64xf32> to vector<8x64xf32>
    %64 = arith.mulf %62, %63 : vector<8x64xf32>
    %65 = vector.broadcast %4 : vector<1x64xf32> to vector<8x64xf32>
    %66 = arith.addf %64, %65 : vector<8x64xf32>
    %cst_30 = arith.constant dense<0.000000e+00> : vector<8x64xf32>
    %67 = tpu.matmul %66, %15, %cst_30 {dimension_numbers = #tpu.dot_dimension_numbers<[1], [0], [0], [1], [0, 0, 1, 1], [], []>} : vector<8x64xf32>, vector<64x64xf32>, vector<8x64xf32> -> vector<8x64xf32>
    %68 = vector.broadcast %5 : vector<1x64xf32> to vector<8x64xf32>
    %69 = arith.addf %67, %68 : vector<8x64xf32>
    %cst_31 = arith.constant 0.000000e+00 : f32
    %70 = vector.broadcast %cst_31 : f32 to vector<8x64xf32>
    %71 = arith.maximumf %69, %70 : vector<8x64xf32>
    %cst_32 = arith.constant dense<0.000000e+00> : vector<8xf32>
    %72 = vector.multi_reduction <add>, %71, %cst_32 [1] : vector<8x64xf32> to vector<8xf32>
    %73 = vector.shape_cast %72 : vector<8xf32> to vector<8x1xf32>
    %cst_33 = arith.constant 6.400000e+01 : f32
    %74 = vector.broadcast %cst_33 : f32 to vector<8x1xf32>
    %75 = arith.divf %73, %74 : vector<8x1xf32>
    %76 = vector.broadcast %75 : vector<8x1xf32> to vector<8x64xf32>
    %77 = arith.subf %71, %76 : vector<8x64xf32>
    %78 = arith.mulf %77, %77 : vector<8x64xf32>
    %cst_34 = arith.constant dense<0.000000e+00> : vector<8xf32>
    %79 = vector.multi_reduction <add>, %78, %cst_34 [1] : vector<8x64xf32> to vector<8xf32>
    %80 = vector.shape_cast %79 : vector<8xf32> to vector<8x1xf32>
    %cst_35 = arith.constant 6.400000e+01 : f32
    %81 = vector.broadcast %cst_35 : f32 to vector<8x1xf32>
    %82 = arith.divf %80, %81 : vector<8x1xf32>
    %83 = vector.broadcast %75 : vector<8x1xf32> to vector<8x64xf32>
    %84 = arith.subf %71, %83 : vector<8x64xf32>
    %cst_36 = arith.constant 9.99999974E-6 : f32
    %85 = vector.broadcast %cst_36 : f32 to vector<8x1xf32>
    %86 = arith.addf %82, %85 : vector<8x1xf32>
    %87 = math.rsqrt %86 : vector<8x1xf32>
    %88 = vector.broadcast %87 : vector<8x1xf32> to vector<8x64xf32>
    %89 = arith.mulf %84, %88 : vector<8x64xf32>
    %90 = vector.broadcast %6 : vector<1x64xf32> to vector<8x64xf32>
    %91 = arith.mulf %89, %90 : vector<8x64xf32>
    %92 = vector.broadcast %7 : vector<1x64xf32> to vector<8x64xf32>
    %93 = arith.addf %91, %92 : vector<8x64xf32>
    %c0_37 = arith.constant 0 : index
    %c0_38 = arith.constant 0 : index
    %94 = vector.load %arg1[%c0_37, %c0_38] : memref<8x64xf32, #tpu.memory_space<vmem>>, vector<8x64xf32>
    %c0_39 = arith.constant 0 : index
    %c0_40 = arith.constant 0 : index
    %95 = vector.load %arg2[%c0_39, %c0_40] : memref<8x1xf32, #tpu.memory_space<vmem>>, vector<8x1xf32>
    %96 = vector.broadcast %95 : vector<8x1xf32> to vector<8x64xf32>
    %97 = arith.mulf %94, %96 : vector<8x64xf32>
    %98 = tpu.concatenate %93, %97 in 1 : vector<8x64xf32>, vector<8x64xf32> -> vector<8x128xf32>
    %cst_41 = arith.constant dense<0.000000e+00> : vector<8x512xf32>
    %99 = tpu.matmul %98, %16, %cst_41 {dimension_numbers = #tpu.dot_dimension_numbers<[1], [0], [0], [1], [0, 0, 1, 1], [], []>} : vector<8x128xf32>, vector<128x512xf32>, vector<8x512xf32> -> vector<8x512xf32>
    %100 = vector.extract_strided_slice %99 {offsets = [0, 0], sizes = [8, 64], strides = [1, 1]} : vector<8x512xf32> to vector<8x64xf32>
    %101 = vector.broadcast %8 : vector<1x64xf32> to vector<8x64xf32>
    %102 = arith.addf %100, %101 : vector<8x64xf32>
    %103 = arith.negf %102 : vector<8x64xf32>
    %104 = math.exp %103 : vector<8x64xf32>
    %cst_42 = arith.constant 1.000000e+00 : f32
    %105 = vector.broadcast %cst_42 : f32 to vector<8x64xf32>
    %106 = arith.addf %105, %104 : vector<8x64xf32>
    %107 = arith.divf %105, %106 : vector<8x64xf32>
    %108 = vector.extract_strided_slice %99 {offsets = [0, 128], sizes = [8, 64], strides = [1, 1]} : vector<8x512xf32> to vector<8x64xf32>
    %109 = vector.broadcast %9 : vector<1x64xf32> to vector<8x64xf32>
    %110 = arith.addf %108, %109 : vector<8x64xf32>
    %111 = arith.negf %110 : vector<8x64xf32>
    %112 = math.exp %111 : vector<8x64xf32>
    %cst_43 = arith.constant 1.000000e+00 : f32
    %113 = vector.broadcast %cst_43 : f32 to vector<8x64xf32>
    %114 = arith.addf %113, %112 : vector<8x64xf32>
    %115 = arith.divf %113, %114 : vector<8x64xf32>
    %116 = vector.extract_strided_slice %99 {offsets = [0, 256], sizes = [8, 64], strides = [1, 1]} : vector<8x512xf32> to vector<8x64xf32>
    %117 = vector.broadcast %10 : vector<1x64xf32> to vector<8x64xf32>
    %118 = arith.addf %116, %117 : vector<8x64xf32>
    %119 = vector.extract_strided_slice %99 {offsets = [0, 384], sizes = [8, 64], strides = [1, 1]} : vector<8x512xf32> to vector<8x64xf32>
    %120 = vector.broadcast %11 : vector<1x64xf32> to vector<8x64xf32>
    %121 = arith.addf %119, %120 : vector<8x64xf32>
    %122 = arith.mulf %107, %121 : vector<8x64xf32>
    %123 = arith.addf %118, %122 : vector<8x64xf32>
    %124 = math.tanh %123 : vector<8x64xf32>
    %cst_44 = arith.constant 1.000000e+00 : f32
    %125 = vector.broadcast %cst_44 : f32 to vector<8x64xf32>
    %126 = arith.subf %125, %115 : vector<8x64xf32>
    %127 = arith.mulf %126, %124 : vector<8x64xf32>
    %128 = arith.mulf %115, %97 : vector<8x64xf32>
    %129 = arith.addf %127, %128 : vector<8x64xf32>
    %cst_45 = arith.constant dense<0.000000e+00> : vector<8xf32>
    %130 = vector.multi_reduction <add>, %129, %cst_45 [1] : vector<8x64xf32> to vector<8xf32>
    %131 = vector.shape_cast %130 : vector<8xf32> to vector<8x1xf32>
    %cst_46 = arith.constant 6.400000e+01 : f32
    %132 = vector.broadcast %cst_46 : f32 to vector<8x1xf32>
    %133 = arith.divf %131, %132 : vector<8x1xf32>
    %134 = vector.broadcast %133 : vector<8x1xf32> to vector<8x64xf32>
    %135 = arith.subf %129, %134 : vector<8x64xf32>
    %136 = arith.mulf %135, %135 : vector<8x64xf32>
    %cst_47 = arith.constant dense<0.000000e+00> : vector<8xf32>
    %137 = vector.multi_reduction <add>, %136, %cst_47 [1] : vector<8x64xf32> to vector<8xf32>
    %138 = vector.shape_cast %137 : vector<8xf32> to vector<8x1xf32>
    %cst_48 = arith.constant 6.400000e+01 : f32
    %139 = vector.broadcast %cst_48 : f32 to vector<8x1xf32>
    %140 = arith.divf %138, %139 : vector<8x1xf32>
    %141 = vector.broadcast %133 : vector<8x1xf32> to vector<8x64xf32>
    %142 = arith.subf %129, %141 : vector<8x64xf32>
    %cst_49 = arith.constant 9.99999974E-6 : f32
    %143 = vector.broadcast %cst_49 : f32 to vector<8x1xf32>
    %144 = arith.addf %140, %143 : vector<8x1xf32>
    %145 = math.rsqrt %144 : vector<8x1xf32>
    %146 = vector.broadcast %145 : vector<8x1xf32> to vector<8x64xf32>
    %147 = arith.mulf %142, %146 : vector<8x64xf32>
    %148 = vector.broadcast %12 : vector<1x64xf32> to vector<8x64xf32>
    %149 = arith.mulf %147, %148 : vector<8x64xf32>
    %cst_50 = arith.constant dense<0.000000e+00> : vector<8xf32>
    %150 = vector.multi_reduction <add>, %149, %cst_50 [1] : vector<8x64xf32> to vector<8xf32>
    %151 = vector.shape_cast %150 : vector<8xf32> to vector<8x1xf32>
    %152 = vector.broadcast %13 : vector<1x1xf32> to vector<8x1xf32>
    %153 = arith.addf %151, %152 : vector<8x1xf32>
    %cst_51 = arith.constant 0.000000e+00 : f32
    %154 = vector.broadcast %cst_51 : f32 to vector<8x63xf32>
    %155 = tpu.concatenate %129, %153, %154 in 1 : vector<8x64xf32>, vector<8x1xf32>, vector<8x63xf32> -> vector<8x128xf32>
    %c0_52 = arith.constant 0 : index
    %c0_53 = arith.constant 0 : index
    %156 = vector.load %arg4[%c0_52, %c0_53] : memref<8x128xf32, #tpu.memory_space<vmem>>, vector<8x128xf32>
    tpu.vector_store %arg4[%c0_52, %c0_53], %155 {strides = array<i32>} : memref<8x128xf32, #tpu.memory_space<vmem>>, vector<8x128xf32>,
    return
  }
}

</mosaic_0001>

<bundles_post_ra>
// kernel: r_critic_forward.1
= control target key start
LH: loop header
LB: loop body
LE: loop exit
PB: predicated region body
PF: predicated region fallthrough
CT: control target
= control target key end

     0   :  { %9 = vsyncpa [#allocation3], 0  ;;  %s749_s15 = smov [#allocation2]   ;;  %s842_s0 = inlined_call_operand.vmem [shape: f32[8,96], index: 0, kind: input, shape index: {}]   ;;  %s843_s1 = inlined_call_operand.vmem [shape: f32[8,64], index: 1, kind: input, shape index: {}]   ;;  %s844_s2 = inlined_call_operand.vmem [shape: f32[8,1], index: 2, kind: input, shape index: {}]   ;;  %s845_s3 = inlined_call_operand.hbm [shape: f32[240,512], index: 3, kind: input, shape index: {}]   ;;  %s846_s4 = inlined_call_operand.vmem [shape: f32[8,128], index: 4, kind: output, shape index: {}]  }
   0x1   :  { %s21_s16 = sshll.u32 %s749_s15, 4  ;;  %s725_s19 = scalar_lea.hbm %s845_s3, 15360  ;;  %s22_s16 = int_to_ptr.vmem [resolvable:$true] %s21_s16 }
   0x2   :  { %p726_p0 = scmp.ne.s32.totalorder %s845_s3, %s725_s19  ;;  %p729_p1 = scmp.lt.u32.totalorder %s725_s19, %s845_s3 }
   0x4   :  { %p731_p2 = pnand %p729_p1, %p726_p0 }
   0x6   :  { %734 = shalt.err (!%p731_p2)
}
   0x7   :  { %s735_s24 = scalar_lea.vmem %s22_s16, 15360  ;;  %p740_p4 = scmp.lt.s32.totalorder %s22_s16, %s22_s16 }
   0x8   :  { %p736_p3 = scmp.ne.s32.totalorder %s22_s16, %s735_s24  ;;  %p741_p5 = scmp.lt.s32.totalorder %s735_s24, %s735_s24 }
   0xa   :  { %p742_p6 = por %p741_p5, %p740_p4 }
   0xc   :  { %p743_p7 = pnand %p742_p6, %p736_p3 }
   0xe   :  { %746 = shalt.err (!%p743_p7)
}
   0xf   :  { %s750_s25 = smov 512   ;;  %s751_s26 = smov 32  }
  0x10   :  { %27 = dma.hbm_to_vmem [thread:$0]  %s845_s3, 15360, %s22_s16, [#allocation3], %s750_s25, %s750_s25, %s751_s26  }
  0x11   :  { %747 = dma.done.wait [#allocation3], 15360  }
  0x12   :  { %748 = vsyncadd [#allocation3], 4294951936  ;;  %vm129_vm0 = vcmask 785408   ;;  %v128_v0 = vld [vmem:[%s842_s0] sm:$0xff]  ;;  %v752_v4 = vmov 0.0|0.0   ;;  %vm753_vm1 = vmmov 0  }
  0x13   :  { %v130_v1 = vsel %vm129_vm0, %v128_v0, 0.0  ;;  %v44_v2 = vld [vmem:[#allocation2 + $0x40] sm:$0xff]  ;;  %603 = vmatprep.subr.bf16.mxu0 %v752_v4  ;;  %621 = vmatprep.subr.bf16.mxu1 %v752_v4  ;;  %v754_v19 = vmov 0.0   ;;  %vm220_vm2 = vcmask 523264   ;;  %v56_v47 = vld [vmem:[#allocation2 + $0x48] sm:$0xff]  ;;  %vm523_vm3 = vcmask 531456  }
  0x14   :  { %131 = vadd.xlane.f32.xlu0 %v130_v1  ;;  %v45_v3 = vld [vmem:[#allocation2 + $0x60] sm:$0xff]  ;;  %581 = vmatprep.mubr.msk.f32.mxu0 %vm753_vm1, %v754_v19  ;;  %v57_v48 = vld [vmem:[#allocation2 + $0x68] sm:$0xff] }
  0x15   :  { %v604_v5 = vpack.c.bf16 %v45_v3, %v44_v2  ;;  %v46_v11 = vld [vmem:[#allocation2 + $0x80] sm:$0xff]  ;;  %600 = vmatprep.mubr.msk.f32.mxu1 %vm753_vm1, %v754_v19  ;;  %v622_v49 = vpack.c.bf16 %v57_v48, %v56_v47  ;;  %v58_v50 = vld [vmem:[#allocation2 + $0x88] sm:$0xff] }
  0x16   :  { %v47_v12 = vld [vmem:[#allocation2 + $0xa0] sm:$0xff]  ;;  %v59_v51 = vld [vmem:[#allocation2 + $0xa8] sm:$0xff] }
  0x17   :  { %605 = vmatpush3.bf16.msra.mxu0 %v604_v5  ;;  %v607_v13 = vpack.c.bf16 %v47_v12, %v46_v11  ;;  %v48_v14 = vld [vmem:[#allocation2 + $0xc0] sm:$0xff]  ;;  %623 = vmatpush3.bf16.msra.mxu1 %v622_v49  ;;  %v625_v52 = vpack.c.bf16 %v59_v51, %v58_v50  ;;  %v60_v53 = vld [vmem:[#allocation2 + $0xc8] sm:$0xff] }
  0x18   :  { %606 = vmatprep.subr.bf16.mxu0 %v752_v4  ;;  %v49_v15 = vld [vmem:[#allocation2 + $0xe0] sm:$0xff]  ;;  %624 = vmatprep.subr.bf16.mxu1 %v752_v4  ;;  %v61_v54 = vld [vmem:[#allocation2 + $0xe8] sm:$0xff] }
  0x19   :  { %v610_v16 = vpack.c.bf16 %v49_v15, %v48_v14  ;;  %v50_v17 = vld [vmem:[#allocation2 + $0x100] sm:$0xff]  ;;  %v628_v55 = vpack.c.bf16 %v61_v54, %v60_v53  ;;  %v62_v56 = vld [vmem:[#allocation2 + $0x108] sm:$0xff]  ;;  %v67_v14 = vld [vmem:[#allocation2 + $0x1d8] sm:$0xff] }
  0x1a   :  { %v51_v18 = vld [vmem:[#allocation2 + $0x120] sm:$0xff]  ;;  %v63_v57 = vld [vmem:[#allocation2 + $0x128] sm:$0xff] }
  0x1b   :  { %608 = vmatpush3.bf16.msra.mxu0 %v607_v13  ;;  %v613_v20 = vpack.c.bf16 %v51_v18, %v50_v17  ;;  %v52_v21 = vld [vmem:[#allocation2 + $0x140] sm:$0xff]  ;;  %626 = vmatpush3.bf16.msra.mxu1 %v625_v52  ;;  %v631_v58 = vpack.c.bf16 %v63_v57, %v62_v56  ;;  %v65_v12 = vld [vmem:[#allocation2 + $0x1c8] sm:$0xff]  ;;  %v95_v57 = vld [vmem:[#allocation2 + $0x2b8] sm:$0xff] }
  0x1c   :  { %609 = vmatprep.subr.bf16.mxu0 %v752_v4  ;;  %v53_v22 = vld [vmem:[#allocation2 + $0x160] sm:$0xff]  ;;  %627 = vmatprep.subr.bf16.mxu1 %v752_v4  ;;  %v69_v13 = vld [vmem:[#allocation2 + $0x1e8] sm:$0xff] }
  0x1d   :  { %v616_v23 = vpack.c.bf16 %v53_v22, %v52_v21  ;;  %v54_v24 = vld [vmem:[#allocation2 + $0x180] sm:$0xff]  ;;  %v633_v15 = vpack.c.bf16 %v69_v13, %v65_v12  ;;  %v66_v21 = vld [vmem:[#allocation2 + $0x1d0] sm:$0xff]  ;;  %v89_v53 = vld [vmem:[#allocation2 + $0x288] sm:$0xff] }
  0x1e   :  { %v55_v25 = vld [vmem:[#allocation2 + $0x1a0] sm:$0xff]  ;;  %v70_v22 = vld [vmem:[#allocation2 + $0x1f0] sm:$0xff]  ;;  %v93_v54 = vld [vmem:[#allocation2 + $0x2a8] sm:$0xff] }
  0x1f   :  { %611 = vmatpush3.bf16.msra.mxu0 %v610_v16  ;;  %v619_v26 = vpack.c.bf16 %v55_v25, %v54_v24  ;;  %v31_v31 = vld [vmem:[#allocation2] ss:$0 sm:$0xff]  ;;  %v32_v33 = vld [vmem:[#allocation2 + $0x1] ss:$0 sm:$0xff]  ;;  %v33_v36 = vld [vmem:[#allocation2 + $0x2] ss:$0 sm:$0xff]  ;;  %629 = vmatpush3.bf16.msra.mxu1 %v628_v55  ;;  %v667_v24 = vpack.c.bf16 %v70_v22, %v66_v21  ;;  %v645_v56 = vpack.c.bf16 %v93_v54, %v89_v53 }
  0x20   :  { %612 = vmatprep.subr.bf16.mxu0 %v752_v4  ;;  %630 = vmatprep.subr.bf16.mxu1 %v752_v4  ;;  %v34_v63 = vld [vmem:[#allocation2 + $0x3] ss:$0 sm:$0xff]  ;;  %v35_v1 = vld [vmem:[#allocation2 + $0x4] ss:$0 sm:$0xff]  ;;  %v71_v16 = vld [vmem:[#allocation2 + $0x1f8] sm:$0xff] }
  0x21   :  { %v327_v5 = vld [vmem:[%s844_s2] sm:$0xff]  ;;  %v77_v25 = vld [vmem:[#allocation2 + $0x228] sm:$0xff]  ;;  %v91_v55 = vld [vmem:[#allocation2 + $0x298] sm:$0xff] }
  0x22   :  { %v64_v17 = vld [vmem:[#allocation2 + $0x1c0] sm:$0xff]  ;;  %v98_v13 = vld [vmem:[#allocation2 + $0x2d0] sm:$0xff] }
  0x23   :  { %614 = vmatpush3.bf16.msra.mxu0 %v613_v20  ;;  %632 = vmatpush3.bf16.msra.mxu1 %v631_v58  ;;  %v68_v18 = vld [vmem:[#allocation2 + $0x1e0] sm:$0xff] }
  0x24   :  { %615 = vmatprep.subr.bf16.mxu0 %v752_v4  ;;  %v635_v20 = vpack.c.bf16 %v68_v18, %v64_v17  ;;  %634 = vmatprep.subr.bf16.mxu1 %v633_v15  ;;  %v88_v58 = vld [vmem:[#allocation2 + $0x280] sm:$0xff]  ;;  %v105_v15 = vld [vmem:[#allocation2 + $0x308] sm:$0xff]  ;;  %v107_v18 = vld [vmem:[#allocation2 + $0x318] sm:$0xff] }
  0x25   :  { %v109_v17 = vld [vmem:[#allocation2 + $0x328] sm:$0xff]  ;;  %v104_v22 = vld [vmem:[#allocation2 + $0x300] sm:$0xff] }
  0x27   :  { %617 = vmatpush3.bf16.msra.mxu0 %v616_v23  ;;  %v73_v23 = vld [vmem:[#allocation2 + $0x208] sm:$0xff] }
  0x28   :  { %618 = vmatprep.subr.bf16.mxu0 %v752_v4  ;;  %v755_v4 = vmov 0  }
  0x29   :  { %705 = vset.pattern.permute.xlu1 %v755_v4  ;;  %706 = vset.pattern.permute.xlu0 %v755_v4  ;;  %v99_v4 = vld [vmem:[#allocation2 + $0x2d8] sm:$0xff] }
  0x2b   :  { %620 = vmatpush3.bf16.msra.mxu0 %v619_v26  ;;  %v75_v26 = vld [vmem:[#allocation2 + $0x218] sm:$0xff] }
  0xa1   :  { %v132_v6 = vpop.xlane.xlu0 %131 }
  0xa2   :  { %v134_v7 = vmul.f32 0.010416667, %v132_v6  ;;  %v36_v6 = vld [vmem:[#allocation2 + $0x5] ss:$0 sm:$0xff] }
  0xa4   :  { %v135_v8 = vsub.f32 %v128_v0, %v134_v7 }
  0xa6   :  { %v136_v9 = vmul.f32 %v135_v8, %v135_v8 }
  0xa8   :  { %v137_v10 = vsel %vm129_vm0, %v136_v9, 0.0 }
  0xa9   :  { %138 = vadd.xlane.f32.xlu0 %v137_v10 }
 0x136   :  { %v139_v27 = vpop.xlane.xlu0 %138 }
 0x137   :  { %v140_v28 = vmul.f32 0.010416667, %v139_v27  ;;  %v79_v27 = vld [vmem:[#allocation2 + $0x238] sm:$0xff] }
 0x139   :  { %v141_v29 = vadd.f32 1e-05, %v140_v28  ;;  %v637_v28 = vpack.c.bf16 %v77_v25, %v73_v23  ;;  %v108_v23 = vld [vmem:[#allocation2 + $0x320] sm:$0xff] }
 0x13a   :  { %v655_v25 = vpack.c.bf16 %v108_v23, %v104_v22 }
 0x13b   :  { %707 = vrsqrt.f32 %v141_v29  ;;  %v669_v29 = vpack.c.bf16 %v79_v27, %v75_v26  ;;  %v110_v26 = vld [vmem:[#allocation2 + $0x330] sm:$0xff]  ;;  %v113_v27 = vld [vmem:[#allocation2 + $0x348] sm:$0xff] }
 0x145   :  { %v708_v30 = vpop.eup %707 }
 0x146   :  { %v143_v32 = vmul.f32 %v708_v30, %v135_v8  ;;  %v72_v30 = vld [vmem:[#allocation2 + $0x200] sm:$0xff] }
 0x148   :  { %v144_v34 = vmul.f32 %v143_v32, %v31_v31  ;;  %v76_v31 = vld [vmem:[#allocation2 + $0x220] sm:$0xff]  ;;  %v74_v32 = vld [vmem:[#allocation2 + $0x210] sm:$0xff] }
 0x14a   :  { %v145_v35 = vadd.f32 %v144_v34, %v32_v33  ;;  %v639_v33 = vpack.c.bf16 %v76_v31, %v72_v30  ;;  %v78_v34 = vld [vmem:[#allocation2 + $0x230] sm:$0xff]  ;;  %v115_v31 = vld [vmem:[#allocation2 + $0x358] sm:$0xff] }
 0x14c   :  { %582 = vmatmul.mubr.msk.f32.vlgmr.msra.gmra.mrb[0].mxu0 %vm129_vm0, %v145_v35  ;;  %v81_v35 = vld [vmem:[#allocation2 + $0x248] sm:$0xff] }
 0x14d   :  { %474 = vmatprep.mubr.f32.mxu0 %v754_v19 }
 0x21f   :  { %v215_v37 = vpop.f32.mrb[0].mxu0 }
 0x220   :  { %v216_v38 = vadd.f32 %v215_v37, %v33_v36  ;;  %v583_v39 = vpop.f32.mrb[1].mxu0  ;;  %v85_v36 = vld [vmem:[#allocation2 + $0x268] sm:$0xff]  ;;  %v671_v37 = vpack.c.bf16 %v78_v34, %v74_v32  ;;  %v119_v32 = vld [vmem:[#allocation2 + $0x378] sm:$0xff] }
 0x221   :  { %v83_v39 = vld [vmem:[#allocation2 + $0x258] sm:$0xff]  ;;  %v689_v34 = vpack.c.bf16 %v119_v32, %v115_v31 }
 0x222   :  { %v219_v40 = vmax.f32 %v216_v38, 0.0  ;;  %v641_v38 = vpack.c.bf16 %v85_v36, %v81_v35  ;;  %v116_v35 = vld [vmem:[#allocation2 + $0x360] sm:$0xff]  ;;  %v114_v36 = vld [vmem:[#allocation2 + $0x350] sm:$0xff] }
 0x224   :  { %v221_v41 = vsel %vm220_vm2, %v219_v40, 0.0 }
 0x225   :  { %222 = vadd.xlane.f32.xlu1 %v221_v41  ;;  %v80_v41 = vld [vmem:[#allocation2 + $0x240] sm:$0xff] }
 0x2b2   :  { %v223_v42 = vpop.xlane.xlu1 %222 }
 0x2b3   :  { %v225_v43 = vmul.f32 0.015625, %v223_v42 }
 0x2b5   :  { %v226_v44 = vsub.f32 %v219_v40, %v225_v43  ;;  %v87_v40 = vld [vmem:[#allocation2 + $0x278] sm:$0xff]  ;;  %v84_v43 = vld [vmem:[#allocation2 + $0x260] sm:$0xff] }
 0x2b6   :  { %v673_v42 = vpack.c.bf16 %v87_v40, %v83_v39  ;;  %v121_v39 = vld [vmem:[#allocation2 + $0x388] sm:$0xff] }
 0x2b7   :  { %v227_v45 = vmul.f32 %v226_v44, %v226_v44  ;;  %v125_v40 = vld [vmem:[#allocation2 + $0x3a8] sm:$0xff] }
 0x2b9   :  { %v228_v46 = vsel %vm220_vm2, %v227_v45, 0.0  ;;  %v86_v45 = vld [vmem:[#allocation2 + $0x270] sm:$0xff] }
 0x2ba   :  { %229 = vadd.xlane.f32.xlu1 %v228_v46  ;;  %v643_v46 = vpack.c.bf16 %v84_v43, %v80_v41  ;;  %v123_v41 = vld [vmem:[#allocation2 + $0x398] sm:$0xff]  ;;  %v661_v43 = vpack.c.bf16 %v125_v40, %v121_v39 }
 0x2cb   :  { %330 = vperm.xlu1 %705, %v327_v5   ;;  %v101_v5 = vld [vmem:[#allocation2 + $0x2e8] sm:$0xff] }
 0x347   :  { %v230_v59 = vpop.xlane.xlu1 %229 }
 0x348   :  { %v231_v60 = vmul.f32 0.015625, %v230_v59  ;;  %v92_v59 = vld [vmem:[#allocation2 + $0x2a0] sm:$0xff] }
 0x34a   :  { %v232_v61 = vadd.f32 1e-05, %v231_v60  ;;  %v326_v60 = vld [vmem:[%s843_s1] sm:$0xff]  ;;  %s756_s1 = smov 64  }
 0x34c   :  { %709 = vrsqrt.f32 %v232_v61  ;;  %v331_v61 = vpop.permute.xlu1 %330 }
 0x356   :  { %v710_v62 = vpop.eup %709 }
 0x357   :  { %v234_v0 = vmul.f32 %v710_v62, %v226_v44  ;;  %v82_v44 = vld [vmem:[#allocation2 + $0x250] sm:$0xff]  ;;  %v677_v62 = vpack.c.bf16 %v95_v57, %v91_v55  ;;  %v37_v57 = vld [vmem:[#allocation2 + $0x6] ss:$0 sm:$0xff] }
 0x358   :  { %v675_v47 = vpack.c.bf16 %v86_v45, %v82_v44  ;;  %v127_v44 = vld [vmem:[#allocation2 + $0x3b8] sm:$0xff]  ;;  %v120_v45 = vld [vmem:[#allocation2 + $0x380] sm:$0xff] }
 0x359   :  { %v235_v2 = vmul.f32 %v234_v0, %v34_v63  ;;  %v647_v63 = vpack.c.bf16 %v92_v59, %v88_v58  ;;  %v90_v0 = vld [vmem:[#allocation2 + $0x290] sm:$0xff]  ;;  %v38_v59 = vld [vmem:[#allocation2 + $0x7] ss:$0 sm:$0xff] }
 0x35b   :  { %v236_v3 = vadd.f32 %v235_v2, %v35_v1  ;;  %v94_v1 = vld [vmem:[#allocation2 + $0x2b0] sm:$0xff] }
 0x35c   :  { %v679_v2 = vpack.c.bf16 %v94_v1, %v90_v0  ;;  %v39_v0 = vld [vmem:[#allocation2 + $0x20] ss:$0 sm:$0xff] }
 0x35d   :  { %601 = vmatmul.mubr.msk.f32.vlgmr.msra.gmra.mrb[0].mxu1 %vm220_vm2, %v236_v3  ;;  %v97_v3 = vld [vmem:[#allocation2 + $0x2c8] sm:$0xff] }
 0x35e   :  { %403 = vmatprep.mubr.f32.mxu1 %v754_v19  ;;  %v665_v19 = vpack.c.bf16 %v71_v16, %v67_v14  ;;  %636 = vmatpush1.bf16.msra.mxu1 %v635_v20  ;;  %v102_v14 = vld [vmem:[#allocation2 + $0x2f0] sm:$0xff]  ;;  %v653_v20 = vpack.c.bf16 %v109_v17, %v105_v15  ;;  %v41_v15 = vld [vmem:[#allocation2 + $0x22] ss:$0 sm:$0xff] }
 0x35f   :  { %638 = vmatprep.subr.bf16.mxu1 %v637_v28  ;;  %v683_v16 = vpack.c.bf16 %v102_v14, %v98_v13  ;;  %v117_v28 = vld [vmem:[#allocation2 + $0x368] sm:$0xff]  ;;  %v42_v13 = vld [vmem:[#allocation2 + $0x23] ss:$0 sm:$0xff] }
 0x360   :  { %666 = vmatprep.subr.bf16.mxu0 %v665_v19  ;;  %v111_v19 = vld [vmem:[#allocation2 + $0x338] sm:$0xff]  ;;  %v657_v30 = vpack.c.bf16 %v117_v28, %v113_v27 }
 0x361   :  { %668 = vmatpush1.bf16.msra.mxu0 %v667_v24  ;;  %v685_v21 = vpack.c.bf16 %v111_v19, %v107_v18  ;;  %v106_v24 = vld [vmem:[#allocation2 + $0x310] sm:$0xff] }
 0x362   :  { %670 = vmatprep.subr.bf16.mxu0 %v669_v29  ;;  %640 = vmatpush1.bf16.msra.mxu1 %v639_v33  ;;  %v687_v29 = vpack.c.bf16 %v110_v26, %v106_v24  ;;  %v112_v33 = vld [vmem:[#allocation2 + $0x340] sm:$0xff] }
 0x363   :  { %642 = vmatprep.subr.bf16.mxu1 %v641_v38  ;;  %v659_v38 = vpack.c.bf16 %v116_v35, %v112_v33 }
 0x365   :  { %672 = vmatpush1.bf16.msra.mxu0 %v671_v37  ;;  %v118_v37 = vld [vmem:[#allocation2 + $0x370] sm:$0xff] }
 0x366   :  { %674 = vmatprep.subr.bf16.mxu0 %v673_v42  ;;  %644 = vmatpush1.bf16.msra.mxu1 %v643_v46  ;;  %v691_v42 = vpack.c.bf16 %v118_v37, %v114_v36  ;;  %v124_v46 = vld [vmem:[#allocation2 + $0x3a0] sm:$0xff] }
 0x367   :  { %646 = vmatprep.subr.bf16.mxu1 %v645_v56  ;;  %v43_v37 = vld [vmem:[#allocation2 + $0x24] ss:$0 sm:$0xff] }
 0x369   :  { %676 = vmatpush1.bf16.msra.mxu0 %v675_v47  ;;  %v693_v47 = vpack.c.bf16 %v127_v44, %v123_v41 }
 0x36a   :  { %678 = vmatprep.subr.bf16.mxu0 %v677_v62  ;;  %648 = vmatpush1.bf16.msra.mxu1 %v647_v63 }
 0x36d   :  { %680 = vmatpush1.bf16.msra.mxu0 %v679_v2 }
 0x430   :  { %v306_v7 = vpop.f32.mrb[0].mxu1 }
 0x431   :  { %v307_v8 = vadd.f32 %v306_v7, %v36_v6  ;;  %v602_v9 = vpop.f32.mrb[1].mxu1  ;;  %v829_v6 = vmul.f32 %v331_v61, %v326_v60  ;;  %v649_v7 = vpack.c.bf16 %v101_v5, %v97_v3  ;;  %v40_v5 = vld [vmem:[#allocation2 + $0x21] ss:$0 sm:$0xff] }
 0x432   :  { %v96_v9 = vld [vmem:[#allocation2 + $0x2c0] sm:$0xff] }
 0x433   :  { %v310_v10 = vmax.f32 %v307_v8, 0.0  ;;  %v103_v8 = vld [vmem:[#allocation2 + $0x2f8] sm:$0xff]  ;;  %650 = vmatprep.subr.bf16.mxu1 %v649_v7 }
 0x435   :  { %v311_v11 = vsel %vm220_vm2, %v310_v10, 0.0 }
 0x436   :  { %312 = vadd.xlane.f32.xlu0 %v311_v11  ;;  %v681_v11 = vpack.c.bf16 %v103_v8, %v99_v4 }
 0x438   :  { %682 = vmatprep.subr.bf16.mxu0 %v681_v11 }
 0x439   :  { %684 = vmatpush1.bf16.msra.mxu0 %v683_v16 }
 0x43a   :  { %686 = vmatprep.subr.bf16.mxu0 %v685_v21 }
 0x43d   :  { %688 = vmatpush1.bf16.msra.mxu0 %v687_v29 }
 0x43e   :  { %690 = vmatprep.subr.bf16.mxu0 %v689_v34 }
 0x441   :  { %692 = vmatpush1.bf16.msra.mxu0 %v691_v42 }
 0x442   :  { %694 = vmatprep.subr.bf16.mxu0 %v693_v47 }
 0x4c3   :  { %v313_v48 = vpop.xlane.xlu0 %312 }
 0x4c4   :  { %v314_v49 = vmul.f32 0.015625, %v313_v48  ;;  %v122_v48 = vld [vmem:[#allocation2 + $0x390] sm:$0xff] }
 0x4c6   :  { %v821_v50 = vsub.f32 %v310_v10, %v314_v49  ;;  %v100_v10 = vld [vmem:[#allocation2 + $0x2e0] sm:$0xff]  ;;  %v126_v49 = vld [vmem:[#allocation2 + $0x3b0] sm:$0xff] }
 0x4c7   :  { %v651_v12 = vpack.c.bf16 %v100_v10, %v96_v9 }
 0x4c8   :  { %v316_v51 = vmul.f32 %v821_v50, %v821_v50 }
 0x4c9   :  { %652 = vmatpush1.bf16.msra.mxu1 %v651_v12 }
 0x4ca   :  { %v317_v52 = vsel %vm220_vm2, %v316_v51, 0.0  ;;  %654 = vmatprep.subr.bf16.mxu1 %v653_v20  ;;  %v663_v51 = vpack.c.bf16 %v124_v46, %v120_v45 }
 0x4cb   :  { %318 = vadd.xlane.f32.xlu0 %v317_v52  ;;  %v695_v52 = vpack.c.bf16 %v126_v49, %v122_v48 }
 0x4cd   :  { %656 = vmatpush1.bf16.msra.mxu1 %v655_v25  ;;  %696 = vmatpush1.bf16.msra.mxu0 %v695_v52 }
 0x4ce   :  { %658 = vmatprep.subr.bf16.mxu1 %v657_v30 }
 0x4d1   :  { %660 = vmatpush1.bf16.msra.mxu1 %v659_v38 }
 0x4d2   :  { %662 = vmatprep.subr.bf16.mxu1 %v661_v43 }
 0x4d5   :  { %664 = vmatpush1.bf16.msra.mxu1 %v663_v51 }
 0x4e1   :  { %335 = vrot.lane.b32.xlu0 %v829_v6, %s756_s1 }
 0x558   :  { %v319_v53 = vpop.xlane.xlu0 %318 }
 0x559   :  { %v320_v54 = vmul.f32 0.015625, %v319_v53 }
 0x55b   :  { %v321_v55 = vadd.f32 1e-05, %v320_v54 }
 0x55c   :  { %v336_v61 = vpop.permute.xlu0 %335 }
 0x55d   :  { %711 = vrsqrt.f32 %v321_v55 }
 0x567   :  { %v712_v56 = vpop.eup %711 }
 0x568   :  { %v323_v58 = vmul.f32 %v712_v56, %v821_v50 }
 0x56a   :  { %v324_v60 = vmul.f32 %v323_v58, %v37_v57 }
 0x56c   :  { %v325_v62 = vadd.f32 %v324_v60, %v38_v59 }
 0x56e   :  { %v338_v63 = vsel %vm220_vm2, %v325_v62, %v336_v61 }
 0x56f   :  { %404 = vmatmul.mubr.f32.vlgmr.msra.gmra.mrb[2].mxu1 %v338_v63  ;;  %475 = vmatmul.mubr.f32.vlgmr.msra.gmra.mrb[2].mxu0 %v338_v63 }
 0x642   :  { %v405_v1 = vpop.f32.mrb[2].mxu1  ;;  %v476_v2 = vpop.f32.mrb[2].mxu0 }
 0x643   :  { %v481_v3 = vadd.f32 %v405_v1, %v39_v0  ;;  %v407_v4 = vpop.f32.mrb[3].mxu1  ;;  %v478_v7 = vpop.f32.mrb[3].mxu0  ;;  %v495_v18 = vadd.f32 %v476_v2, %v41_v15 }
 0x644   :  { %v488_v9 = vadd.f32 %v407_v4, %v40_v5  ;;  %v496_v16 = vadd.f32 %v478_v7, %v42_v13 }
 0x645   :  { %v533_v8 = vmul.f32 -1.442695, %v481_v3 }
 0x646   :  { %v534_v10 = vmul.f32 -1.442695, %v488_v9 }
 0x647   :  { %713 = vpow2.f32 %v533_v8 }
 0x648   :  { %715 = vpow2.f32 %v534_v10 }
 0x651   :  { %v714_v50 = vpop.eup %713 }
 0x652   :  { %v485_v11 = vadd.f32 1.0, %v714_v50  ;;  %v716_v12 = vpop.eup %715 }
 0x653   :  { %v492_v14 = vadd.f32 1.0, %v716_v12 }
 0x654   :  { %717 = vrcp.f32 %v485_v11 }
 0x655   :  { %719 = vrcp.f32 %v492_v14 }
 0x65e   :  { %v718_v17 = vpop.eup %717 }
 0x65f   :  { %v497_v19 = vmul.f32 %v718_v17, %v496_v16  ;;  %v720_v21 = vpop.eup %719 }
 0x660   :  { %v500_v22 = vsub.f32 1.0, %v720_v21  ;;  %v502_v25 = vmul.f32 %v720_v21, %v829_v6 }
 0x661   :  { %v498_v20 = vadd.f32 %v497_v19, %v495_v18 }
 0x663   :  { %721 = vtanh.f32 %v498_v20 }
 0x66d   :  { %v722_v23 = vpop.eup %721 }
 0x66e   :  { %v501_v24 = vmul.f32 %v722_v23, %v500_v22 }
 0x670   :  { %v503_v26 = vadd.f32 %v502_v25, %v501_v24 }
 0x672   :  { %v504_v27 = vsel %vm220_vm2, %v503_v26, 0.0 }
 0x673   :  { %505 = vadd.xlane.f32.xlu1 %v504_v27 }
 0x700   :  { %v506_v28 = vpop.xlane.xlu1 %505 }
 0x701   :  { %v507_v29 = vmul.f32 0.015625, %v506_v28 }
 0x703   :  { %v508_v30 = vsub.f32 %v503_v26, %v507_v29 }
 0x705   :  { %v509_v31 = vmul.f32 %v508_v30, %v508_v30 }
 0x707   :  { %v510_v32 = vsel %vm220_vm2, %v509_v31, 0.0 }
 0x708   :  { %511 = vadd.xlane.f32.xlu0 %v510_v32 }
 0x795   :  { %v512_v33 = vpop.xlane.xlu0 %511 }
 0x796   :  { %v513_v34 = vmul.f32 0.015625, %v512_v33 }
 0x798   :  { %v514_v35 = vadd.f32 1e-05, %v513_v34 }
 0x79a   :  { %723 = vrsqrt.f32 %v514_v35 }
 0x7a4   :  { %v724_v36 = vpop.eup %723 }
 0x7a5   :  { %v516_v38 = vmul.f32 %v724_v36, %v508_v30 }
 0x7a7   :  { %v517_v39 = vmul.f32 %v516_v38, %v43_v37 }
 0x7a9   :  { %v518_v6 = vsel %vm220_vm2, %v517_v39, 0.0 }
 0x7aa   :  { %519 = vadd.xlane.f32.xlu1 %v518_v6 }
 0x837   :  { %v520_v40 = vpop.xlane.xlu1 %519 }
 0x838   :  { %v521_v41 = vadd.f32 %v520_v40, %v43_v37 }
 0x83a   :  { %v522_v42 = vsel %vm220_vm2, %v503_v26, %v521_v41 }
 0x83b   :  { %v524_v43 = vsel %vm523_vm3, %v522_v42, 0.0 }
 0x83c   :  { %525 = vst [vmem:[%s846_s4] sm:$0xff] %v524_v43 }
 0x83d   :  { %530 = vsyncpa [#allocation3], 1 }

</bundles_post_ra>
